<compile_context>
chip_gen: v7x
topology: tpu7x:2x2x1
jax: 0.10.0
libtpu: 0.0.40
codegen_flags: <defaults>
</compile_context>

<pallas_src>
import functools
import math

import jax
import jax.numpy as jnp
from jax.experimental import pallas as pl
from jax.experimental.pallas import tpu as pltpu

LANE = 128                      # lane width; all kernel output / K dims padded to this
MATMUL_DTYPE = jnp.bfloat16     # MXU operand dtype (accumulation stays f32)


def _round_up(x, m):
    return (x + m - 1) // m * m


def _pick_tile_m(M):
    """Largest tile (<=512, multiple of 8) dividing M that yields >=2 grid steps."""
    for t in (512, 256, 128, 64, 32, 16, 8):
        if M % t == 0 and M // t >= 2:
            return t
    return M   # small / odd M: single full-extent block (allowed by Pallas)


# ----------------------------------------------------------------------------
# Pallas kernels
# ----------------------------------------------------------------------------
def _matmul_relu_kernel(x_ref, w_ref, o_ref):
    """o = relu(x @ w); bf16 operands, f32 accumulation (conv layers, no bias)."""
    acc = jnp.dot(x_ref[...], w_ref[...], preferred_element_type=jnp.float32)
    o_ref[...] = jnp.maximum(acc, 0.0).astype(o_ref.dtype)


def _fused_head_kernel(*refs, n_hidden, inv_n_actions):
    """Fused value-MLP + advantage-MLP + dueling combine.

    refs = (feat, [w_i, b_i] * n_hidden, w2v, b2v, w2a, b2a, out).
    Hidden layers hold both heads side by side (block-diagonal weights).  The
    value output weight is broadcast over every output column, so the final
    combine is purely element-wise.  Padded adv columns are exactly zero, so
    sum(adv) * (1/n_actions) is the exact dueling mean.
    """
    feat_ref = refs[0]
    out_ref = refs[-1]
    h = feat_ref[...]
    idx = 1
    for _ in range(n_hidden):
        w_ref, b_ref = refs[idx], refs[idx + 1]
        idx += 2
        acc = jnp.dot(h, w_ref[...], preferred_element_type=jnp.float32)
        acc = jnp.maximum(acc + b_ref[...], 0.0)      # bias + relu in f32
        h = acc.astype(MATMUL_DTYPE)                  # bf16 only feeds the MXU
    w2v_ref, b2v_ref = refs[idx], refs[idx + 1]
    w2a_ref, b2a_ref = refs[idx + 2], refs[idx + 3]
    v = jnp.dot(h, w2v_ref[...], preferred_element_type=jnp.float32) + b2v_ref[...]
    a = jnp.dot(h, w2a_ref[...], preferred_element_type=jnp.float32) + b2a_ref[...]
    mean_a = jnp.sum(a, axis=1, keepdims=True) * inv_n_actions
    out_ref[...] = (v + (a - mean_a)).astype(out_ref.dtype)


# ----------------------------------------------------------------------------
# pallas_call wrappers
# ----------------------------------------------------------------------------
def pallas_matmul_relu(x, w):
    """x: [M, K] bf16, w: [K, N] bf16, K % 128 == 0, N % 128 == 0 -> relu(x@w) bf16."""
    M, K = x.shape
    K2, N = w.shape
    assert K == K2 and K % LANE == 0 and N % LANE == 0
    tile_m = _pick_tile_m(M)
    grid_m = pl.cdiv(M, tile_m)
    return pl.pallas_call(
        _matmul_relu_kernel,
        grid=(grid_m,),
        in_specs=[
            pl.BlockSpec((tile_m, K), lambda i: (i, 0)),
            pl.BlockSpec((K, N), lambda i: (0, 0)),        # weight stays resident
        ],
        out_specs=pl.BlockSpec((tile_m, N), lambda i: (i, 0)),
        out_shape=jax.ShapeDtypeStruct((M, N), MATMUL_DTYPE),
        compiler_params=pltpu.CompilerParams(dimension_semantics=("parallel",)),
        cost_estimate=pl.CostEstimate(
            flops=2 * M * K * N, transcendentals=0,
            bytes_accessed=(M * K + K * N + M * N) * 2),
    )(x, w)


def pallas_fused_head(feat, head, n_actions):
    """feat: [B, Kf] bf16 -> Q-values [B, NP] f32 (NP lane-padded; caller slices)."""
    B, Kf = feat.shape
    hidden = head["hidden"]
    w2v, b2v, w2a, b2a = head["w2v"], head["b2v"], head["w2a"], head["b2a"]
    NP = w2v.shape[1]
    tile_b = _pick_tile_m(B)
    grid_b = pl.cdiv(B, tile_b)

    inputs = [feat]
    in_specs = [pl.BlockSpec((tile_b, Kf), lambda i: (i, 0))]
    flops = 0
    d = Kf
    for (w, b) in hidden:
        inputs += [w, b]
        in_specs += [pl.BlockSpec(w.shape, lambda i: (0, 0)),
                     pl.BlockSpec(b.shape, lambda i: (0, 0))]
        flops += 2 * B * d * w.shape[1]
        d = w.shape[1]
    for arr in (w2v, b2v, w2a, b2a):
        inputs.append(arr)
        in_specs.append(pl.BlockSpec(arr.shape, lambda i: (0, 0)))
    flops += 2 * (2 * B * d * NP)
    bytes_accessed = sum(int(a.size) * a.dtype.itemsize for a in inputs) + B * NP * 4

    kern = functools.partial(_fused_head_kernel, n_hidden=len(hidden),
                             inv_n_actions=1.0 / n_actions)
    return pl.pallas_call(
        kern,
        grid=(grid_b,),
        in_specs=in_specs,
        out_specs=pl.BlockSpec((tile_b, NP), lambda i: (i, 0)),
        out_shape=jax.ShapeDtypeStruct((B, NP), jnp.float32),
        compiler_params=pltpu.CompilerParams(dimension_semantics=("parallel",)),
        cost_estimate=pl.CostEstimate(flops=flops, transcendentals=0,
                                      bytes_accessed=bytes_accessed),
    )(*inputs)


# ----------------------------------------------------------------------------
# Glue: NHWC im2col (slices + stack only; no transposes, matmul stays in Pallas)
# ----------------------------------------------------------------------------
def im2col_nhwc(x, k, s, p):
    """x: [B, H, W, C] -> patches [B*Ho*Wo, k*k*C] with (kh, kw, c) column order."""
    B, H, W, C = x.shape
    Ho = (H + 2 * p - (k - 1) - 1) // s + 1
    Wo = (W + 2 * p - (k - 1) - 1) // s + 1
    xp = jnp.pad(x, ((0, 0), (p, p), (p, p), (0, 0)))
    cols = []
    for kh in range(k):
        for kw in range(k):
            cols.append(xp[:, kh:kh + s * Ho:s, kw:kw + s * Wo:s, :])
    patches = jnp.stack(cols, axis=3)                      # [B, Ho, Wo, k*k, C]
    return patches.reshape(B * Ho * Wo, k * k * C), Ho, Wo


# ----------------------------------------------------------------------------
# Parameter init (mimics kaiming_normal_(nonlinearity='relu'), zero biases)
# ----------------------------------------------------------------------------
def init_params(key, input_dim, output_dim, conv_params, linear_sizes):
    c_in, h_in, w_in = input_dim
    params = {"convs": [], "n_actions": output_dim}

    c_in_real = c_in
    c_in_pad = c_in          # first conv reads the raw (unpadded) input channels
    first = True
    for (c_out, k, s, p) in conv_params:
        key, sub = jax.random.split(key)
        fan_in = c_in_real * k * k
        std = math.sqrt(2.0 / fan_in)
        # PyTorch Conv2d layout (C_out, C_in, kh, kw); bias=False in the module.
        w = jax.random.normal(sub, (c_out, c_in_real, k, k), jnp.float32) * std
        if first:
            w = w * (1.0 / 255.0)        # fold the module's x/255 into conv1 weights
        w4 = w.transpose(2, 3, 1, 0)     # (kh, kw, C_in, C_out) = im2col column order
        if c_in_pad != c_in_real:        # incoming activation is channel-padded
            w4 = jnp.pad(w4, ((0, 0), (0, 0), (0, c_in_pad - c_in_real), (0, 0)))
        w2d = w4.reshape(k * k * c_in_pad, c_out)
        k_pad = _round_up(w2d.shape[0], LANE)
        w2d = jnp.pad(w2d, ((0, k_pad - w2d.shape[0]), (0, LANE - c_out)))
        params["convs"].append({"w": w2d.astype(MATMUL_DTYPE),
                                "k": k, "s": s, "p": p, "k_pad": k_pad})
        h_in = (h_in + 2 * p - (k - 1) - 1) // s + 1
        w_in = (w_in + 2 * p - (k - 1) - 1) // s + 1
        c_in_real = c_out
        c_in_pad = LANE
        first = False

    # ---------------- fused dueling head --------------------------------------
    C2, H2, W2 = c_in_real, h_in, w_in
    flat_torch = C2 * H2 * W2
    Kf = H2 * W2 * LANE                 # NHWC(+channel-pad) flatten width

    def make_head(key, in_dim, sizes, out_dim):
        layers, d = [], in_dim
        for sz in sizes:
            key, sub = jax.random.split(key)
            layers.append((jax.random.normal(sub, (d, sz), jnp.float32)
                           * math.sqrt(2.0 / d), jnp.zeros((sz,), jnp.float32)))
            d = sz
        key, sub = jax.random.split(key)
        final = (jax.random.normal(sub, (d, out_dim), jnp.float32)
                 * math.sqrt(2.0 / d), jnp.zeros((out_dim,), jnp.float32))
        return key, layers, final

    key, v_layers, v_final = make_head(key, flat_torch, linear_sizes, 1)
    key, a_layers, a_final = make_head(key, flat_torch, linear_sizes, output_dim)

    def reorder_rows(w):
        # PyTorch flatten row order (C, H, W) -> our (H, W, C_padded) order.
        n = w.shape[1]
        w = w.reshape(C2, H2, W2, n).transpose(1, 2, 0, 3)
        w = jnp.pad(w, ((0, 0), (0, 0), (0, LANE - C2), (0, 0)))
        return w.reshape(Kf, n)

    hidden = []
    h0 = linear_sizes[0]
    hc = _round_up(2 * h0, LANE)
    w_cat = jnp.zeros((Kf, hc), jnp.float32)
    w_cat = w_cat.at[:, 0:h0].set(reorder_rows(v_layers[0][0]))
    w_cat = w_cat.at[:, h0:2 * h0].set(reorder_rows(a_layers[0][0]))
    b_cat = jnp.zeros((1, hc), jnp.float32)
    b_cat = b_cat.at[0, 0:h0].set(v_layers[0][1]).at[0, h0:2 * h0].set(a_layers[0][1])
    hidden.append((w_cat.astype(MATMUL_DTYPE), b_cat))
    prev_h, prev_hc = h0, hc
    for li in range(1, len(linear_sizes)):
        hl = linear_sizes[li]
        hc = _round_up(2 * hl, LANE)
        w_cat = jnp.zeros((prev_hc, hc), jnp.float32)
        w_cat = w_cat.at[0:prev_h, 0:hl].set(v_layers[li][0])
        w_cat = w_cat.at[prev_h:2 * prev_h, hl:2 * hl].set(a_layers[li][0])
        b_cat = jnp.zeros((1, hc), jnp.float32)
        b_cat = b_cat.at[0, 0:hl].set(v_layers[li][1]).at[0, hl:2 * hl].set(a_layers[li][1])
        hidden.append((w_cat.astype(MATMUL_DTYPE), b_cat))
        prev_h, prev_hc = hl, hc

    n_pad = _round_up(output_dim, LANE)
    # Value output weight is replicated across every output lane so the kernel's
    # value matrix is already broadcast (never emits a [B, 1] narrow block).
    w2v = jnp.zeros((prev_hc, n_pad), jnp.float32)
    w2v = w2v.at[0:prev_h, :].set(jnp.broadcast_to(v_final[0], (prev_h, n_pad)))
    b2v = jnp.full((1, n_pad), v_final[1][0], jnp.float32)
    w2a = jnp.zeros((prev_hc, n_pad), jnp.float32)
    w2a = w2a.at[prev_h:2 * prev_h, 0:output_dim].set(a_final[0])
    b2a = jnp.zeros((1, n_pad), jnp.float32)
    b2a = b2a.at[0, 0:output_dim].set(a_final[1])

    params["head"] = {"hidden": hidden,
                      "w2v": w2v.astype(MATMUL_DTYPE), "b2v": b2v,
                      "w2a": w2a.astype(MATMUL_DTYPE), "b2a": b2a}
    return params


# ----------------------------------------------------------------------------
# Forward passes
# ----------------------------------------------------------------------------
def dueling_forward(params, x):
    """x: [B, C, H, W] float32 (NCHW, same as PyTorch)."""
    B = x.shape[0]
    # single NCHW -> NHWC transpose of the raw input; downstream stays channel-last
    act = jnp.transpose(x, (0, 2, 3, 1)).astype(MATMUL_DTYPE)
    for conv in params["convs"]:
        patches, Ho, Wo = im2col_nhwc(act, conv["k"], conv["s"], conv["p"])
        k_real = patches.shape[1]
        if conv["k_pad"] != k_real:
            patches = jnp.pad(patches, ((0, 0), (0, conv["k_pad"] - k_real)))
        out = pallas_matmul_relu(patches, conv["w"])       # [B*Ho*Wo, 128] bf16
        act = out.reshape(B, Ho, Wo, out.shape[1])
    feat = act.reshape(B, -1)                              # [B, H*W*128] (contiguous)
    q_pad = pallas_fused_head(feat, params["head"], params["n_actions"])
    return q_pad[:, :params["n_actions"]]                  # drop lane padding


def ddqn_forward(online_params, target_params, x, version="online"):
    if version == "online":
        out = dueling_forward(online_params, x)
    elif version == "target":
        out = dueling_forward(target_params, x)
    else:
        raise ValueError(version)
    # torch.squeeze(out, -1): only squeezes if last dim == 1
    if out.shape[-1] == 1:
        out = jnp.squeeze(out, axis=-1)
    return out


# ----------------------------------------------------------------------------
if __name__ == "__main__":
    input_dim = (4, 16, 16)                  # (C, H, W)
    output_dim = 6
    conv_params = [(8, 3, 1, 1),             # (c_out, kernel, stride, padding)
                   (16, 3, 2, 1)]
    linear_sizes = [32]
    batch = 2

    key = jax.random.PRNGKey(0)
    key, pkey, xkey = jax.random.split(key, 3)
    online_params = init_params(pkey, input_dim, output_dim, conv_params, linear_sizes)
    target_params = jax.tree_util.tree_map(lambda a: a, online_params)  # copy of online

    x = jax.random.uniform(xkey, (batch,) + input_dim, jnp.float32,
                           minval=0.0, maxval=255.0)

    out_online = ddqn_forward(online_params, target_params, x, version="online")
    out_target = ddqn_forward(online_params, target_params, x, version="target")
    jax.block_until_ready(out_online)
    jax.block_until_ready(out_target)

    assert out_online.shape == (batch, output_dim)
    assert bool(jnp.all(jnp.isfinite(out_online)))
    assert jnp.allclose(out_online, out_target)   # target is an exact copy of online
    print("KERNEL_OK")
</pallas_src>

<mosaic_0001>
module attributes {stable_mosaic.version = 11 : i64} {
  func.func @_matmul_relu_kernel(%arg0: i32, %arg1: memref<256x128xbf16, #tpu.memory_space<vmem>>, %arg2: memref<128x128xbf16, #tpu.memory_space<vmem>>, %arg3: memref<256x128xbf16, #tpu.memory_space<vmem>>) attributes {dimension_semantics = [#tpu.dimension_semantics<parallel>], iteration_bounds = array<i64: 2>, scalar_prefetch = 0 : i64, scratch_operands = 0 : i64, tpu.core_type = #tpu.core_type<tc>, window_params = [{transform_indices = @transform_0, window_bounds = array<i64: 256, 128>}, {pipeline_mode = #tpu.pipeline_mode<synchronous>, transform_indices = @transform_1, window_bounds = array<i64: 128, 128>}, {transform_indices = @transform_2, window_bounds = array<i64: 256, 128>}]} {
    %c0 = arith.constant 0 : index
    %c0_0 = arith.constant 0 : index
    %0 = vector.load %arg1[%c0, %c0_0] : memref<256x128xbf16, #tpu.memory_space<vmem>>, vector<256x128xbf16>
    %c0_1 = arith.constant 0 : index
    %c0_2 = arith.constant 0 : index
    %1 = vector.load %arg2[%c0_1, %c0_2] : memref<128x128xbf16, #tpu.memory_space<vmem>>, vector<128x128xbf16>
    %cst = arith.constant dense<0.000000e+00> : vector<256x128xf32>
    %2 = tpu.matmul %0, %1, %cst {dimension_numbers = #tpu.dot_dimension_numbers<[1], [0], [0], [1], [0, 0, 1, 1], [], []>} : vector<256x128xbf16>, vector<128x128xbf16>, vector<256x128xf32> -> vector<256x128xf32>
    %cst_3 = arith.constant 0.000000e+00 : f32
    %3 = vector.broadcast %cst_3 : f32 to vector<256x128xf32>
    %4 = arith.maximumf %2, %3 : vector<256x128xf32>
    %5 = arith.truncf %4 : vector<256x128xf32> to vector<256x128xbf16>
    %c0_4 = arith.constant 0 : index
    %c0_5 = arith.constant 0 : index
    %6 = vector.load %arg3[%c0_4, %c0_5] : memref<256x128xbf16, #tpu.memory_space<vmem>>, vector<256x128xbf16>
    tpu.vector_store %arg3[%c0_4, %c0_5], %5 {strides = array<i32>} : memref<256x128xbf16, #tpu.memory_space<vmem>>, vector<256x128xbf16>,
    return
  }
  func.func @transform_0(%arg0: i32) -> (i32, i32) {
    %c0_i32 = arith.constant 0 : i32
    %c0_i32_0 = arith.constant 0 : i32
    return %arg0, %c0_i32 : i32, i32
  }
  func.func @transform_1(%arg0: i32) -> (i32, i32) {
    %c0_i32 = arith.constant 0 : i32
    %c0_i32_0 = arith.constant 0 : i32
    %c0_i32_1 = arith.constant 0 : i32
    return %c0_i32, %c0_i32_0 : i32, i32
  }
  func.func @transform_2(%arg0: i32) -> (i32, i32) {
    %c0_i32 = arith.constant 0 : i32
    %c0_i32_0 = arith.constant 0 : i32
    return %arg0, %c0_i32 : i32, i32
  }
}

</mosaic_0001>

<bundles_post_ra>
// kernel: tpu_custom_call.1
= control target key start
LH: loop header
LB: loop body
LE: loop exit
PB: predicated region body
PF: predicated region fallthrough
CT: control target
= control target key end

     0   :  { %7 = vsyncpa [#allocation3], 0  ;;  %s1596_s0 = inlined_call_operand.hbm [shape: bf16[512,128], index: 0, kind: input, shape index: {}]   ;;  %s1597_s1 = inlined_call_operand.hbm [shape: bf16[128,128], index: 1, kind: input, shape index: {}]   ;;  %s1598_s2 = inlined_call_operand.hbm [shape: bf16[512,128], index: 2, kind: output, shape index: {}]  }
   0x1   :  { %9 = vsyncpa [#allocation3 + $0x1], 0 }
   0x2   :  { %10 = vsyncpa [#allocation6], 0 }
   0x3   :  { %11 = vsyncpa [#allocation4], 0 }
   0x4   :  { %13 = vsyncpa [#allocation4 + $0x1], 0  ;;  %s1348_s9 = smov 0   ;;  %s1350_s10 = smov 0  }
   0x5   :  { %s1352_s11 = smov 0   ;;  %s1354_s12 = smov 0  }
   0x6 LB: > { %s1369_s13 = sadd.s32 4294967295, %s1324_s12   ;;  %s822_s14 = sadd.s32 4294967294, %s1324_s12   ;;  %s1324_s12 = sphi %s1354_s12, %s1618_s12   ;;  %s1320_s11 = sphi %s1352_s11, %s1617_s11   ;;  %s1316_s10 = sphi %s1350_s10, %s1616_s10   ;;  %s1312_s9 = sphi %s1348_s9, %s1615_s9  }
   0x7   : > { %p39_p0 = scmp.ne.s32.totalorder %s1316_s10, %s1312_s9  ;;  %p1599_p1 = scmp.eq.s32.totalorder %s1369_s13, 0 }
   0x8   : > { %p90_p3 = scmp.eq.s32.totalorder %s822_s14, 1  ;;  %p823_p5 = scmp.ge.s32.totalorder %s1324_s12, 1 }
   0x9   : > { %p1378_p4 = por %p1599_p1, %p39_p0  ;;  %p97_p7 = scmp.lt.s32.totalorder %s1324_s12, 3 }
   0xa   : > { %p1383_p6 = por %p90_p3, %p39_p0  ;;  %s1326_s18 = smov [#allocation5]  }
   0xb   : > { %s1602_s15 = scalar_select %p1378_p4, 1, 0 }
   0xc   : > { %s1603_s16 = scalar_select %p1383_p6, 1, 0 }
   0xd   : > { %p1388_p8 = pnand %p823_p5, %p97_p7  ;;  %s109_s19 = sshll.u32 %s1326_s18, 4  ;;  %s1392_s19 = int_to_ptr.vmem [resolvable:$true] %s109_s19 }
   0xe   : > { %s1404_s21 = sadd.s32 1, %s1324_s12   ;;  %s26_s22 = sadd.s32 1, %s1320_s11 }
   0xf   : > { %s1604_s17 = scalar_select %p1388_p8, 1, 0 }
  0x10   : > { %p1119_p9 = pneg %p1388_p8  ;;  %s23_s23 = ssub.s32 %s1324_s12, %s1404_s21 }
  0x11   : > { %s1196_s26 = scalar_lea.hbm %s1597_s1, 1024 }
  0x12   : > { %p1399_p11 = pnand %p1119_p9, %p1599_p1  ;;  %p1197_p12 = scmp.ne.s32.totalorder %s1597_s1, %s1196_s26 }
  0x13   : > { %p1203_p5 = scmp.lt.u32.totalorder %s1196_s26, %s1597_s1 }
  0x14   : > { %p1198_p13 = pneg %p1399_p11 }
  0x16   : > { %p1199_p0 = pnand %p1198_p13, %p1197_p12 }
  0x18   : > { %p1200_p3 = pneg %p1199_p0 }
  0x1a   : > { %p1205_p7 = pnand %p1203_p5, %p1200_p3 }
  0x1c   : > { %1208 = shalt.err (!%p1205_p7)
}
  0x1d   : > { %s1209_s3 = scalar_lea.vmem %s1392_s19, 1024  ;;  %p1217_p2 = scmp.lt.s32.totalorder %s1392_s19, %s1392_s19 }
  0x1e   : > { %p1210_p9 = scmp.ne.s32.totalorder %s1392_s19, %s1209_s3  ;;  %p1218_p6 = scmp.lt.s32.totalorder %s1209_s3, %s1209_s3 }
  0x20   : > { %p1212_p10 = pnand %p1210_p9, %p1198_p13  ;;  %p1219_p4 = por %p1218_p6, %p1217_p2 }
  0x22   : > { %p1213_p1 = pneg %p1212_p10 }
  0x24   : > { %p1220_p8 = pnand %p1219_p4, %p1213_p1 }
  0x26   : > { %1223 = shalt.err (!%p1220_p8)
}
  0x27   : > { %s1327_s4 = smov 64   ;;  %s1328_s5 = smov 4  }
  0x28   : > { %1122 = dma.hbm_to_vmem [thread:$0]  (!%p1399_p11), %s1597_s1, 1024, %s1392_s19, [#allocation6], %s1327_s4, %s1327_s4, %s1328_s5  }
  0x29   : > { %p24_p1 = scmp.eq.s32.totalorder %s23_s23, 0  ;;  %p33_p2 = scmp.ne.s32.totalorder %s1320_s11, %s1316_s10 }
  0x2a   : > { %p34_p4 = scmp.eq.s32.totalorder %s1324_s12, 0  ;;  %p1132_p6 = scmp.lt.s32.totalorder %s1324_s12, 2 }
  0x2b   : > { %s1438_s8 = scalar_select %p24_p1, %s1320_s11, %s26_s22  }
  0x2c   : > { %p35_p8 = por %p34_p4, %p33_p2  ;;  %p1606_p10 = scmp.eq.s32.totalorder %s1369_s13, 1 }
  0x2d   : > { %s123_s18 = sand.u32 1, %s1320_s11   ;;  %s894_s20 = sshll.u32 %s1324_s12, 11 }
  0x2e   : > { %p1442_p12 = por %p1606_p10, %p33_p2  ;;  %s826_s24 = sshll.u32 %s123_s18, 7 }
  0x2f   : > { %s1451_s27 = scalar_lea.hbm %s1596_s0, %s894_s20  ;;  %s127_s19 = scalar_lea.vmem [#allocation2], %s826_s24 }
  0x30   : > { %s134_s22 = sshll.u32 %s127_s19, 4  ;;  %p1453_p11 = pnand %p1132_p6, %p35_p8  ;;  %s1457_s22 = int_to_ptr.vmem [resolvable:$true] %s134_s22 }
  0x31   : > { %s1459_s28 = scalar_lea.sflag [#allocation3], %s123_s18  ;;  %s1224_s29 = scalar_lea.hbm %s1451_s27, 2048 }
  0x32   : > { %p1225_p13 = scmp.ne.s32.totalorder %s1451_s27, %s1224_s29  ;;  %p1226_p0 = pneg %p1453_p11 }
  0x33   : > { %s1229_s6 = scalar_lea.hbm %s1596_s0, 4096  ;;  %p1230_p7 = scmp.lt.u32.totalorder %s1451_s27, %s1596_s0 }
  0x34   : > { %p1227_p3 = pnand %p1226_p0, %p1225_p13  ;;  %p1231_p9 = scmp.lt.u32.totalorder %s1229_s6, %s1224_s29 }
  0x35   : > { %p1233_p2 = scmp.lt.u32.totalorder %s1224_s29, %s1451_s27 }
  0x36   : > { %p1228_p5 = pneg %p1227_p3  ;;  %p1232_p1 = por %p1231_p9, %p1230_p7 }
  0x38   : > { %p1234_p4 = por %p1233_p2, %p1232_p1 }
  0x3a   : > { %p1235_p6 = pnand %p1234_p4, %p1228_p5 }
  0x3c   : > { %1238 = shalt.err (!%p1235_p6)
}
  0x3d   : > { %s1239_s18 = scalar_lea.vmem %s1457_s22, 2048  ;;  %s1329_s24 = smov [#allocation2]  }
  0x3e   : > { %p1240_p8 = scmp.ne.s32.totalorder %s1457_s22, %s1239_s18  ;;  %s1244_s25 = sshll.u32 %s1329_s24, 4  ;;  %s1245_s25 = int_to_ptr.vmem [resolvable:$false] %s1244_s25 }
  0x3f   : > { %s1246_s26 = scalar_lea.vmem %s1245_s25, 4096  ;;  %p1247_p3 = scmp.lt.s32.totalorder %s1457_s22, %s1245_s25 }
  0x40   : > { %p1242_p10 = pnand %p1240_p8, %p1226_p0  ;;  %p1248_p7 = scmp.lt.s32.totalorder %s1246_s26, %s1239_s18 }
  0x42   : > { %p1243_p13 = pneg %p1242_p10  ;;  %p1249_p9 = por %p1248_p7, %p1247_p3 }
  0x44   : > { %p1250_p1 = pnand %p1249_p9, %p1243_p13 }
  0x46   : > { %1253 = shalt.err (!%p1250_p1)
}
  0x47   : > { %1126 = dma.hbm_to_vmem [thread:$0]  (!%p1453_p11), %s1451_s27, 2048, %s1457_s22, %s1459_s28, %s1327_s4, %s1327_s4, %s1328_s5  }
  0x48   : > { %p1609_p0 = scmp.ne.s32.totalorder %s1604_s17, 0 }
  0x49   : > { %s1493_s19 = sand.u32 (!%p1609_p0), 1, %s1316_s10   ;;  %p1610_p5 = scmp.ne.s32.totalorder (!%p1609_p0), %s1602_s15, 0 }
  0x4a   : > { %146 = sbr.rel (%p1609_p0) target bundleno = 376 (0x178), region = 28  ;;  %s830_s29 = sshll.u32 (!%p1609_p0), %s1493_s19, 7 }
  0x4b   : > { %s149_s30 = scalar_lea.sflag (!%p1609_p0), [#allocation3], %s1493_s19  ;;  %s1499_s23 = scalar_lea.vmem (!%p1609_p0), [#allocation2], %s830_s29 }
  0x51   : > { %1299 = dma.done.wait (%p1610_p5), %s149_s30, 2048  }
  0x52   : > { %1301 = vsyncadd (%p1610_p5), %s149_s30, 4294965248  ;;  %p1611_p11 = scmp.eq.s32.totalorder %s1369_s13, 0 }
  0x54   : > { %1303 = dma.done.wait (%p1611_p11), [#allocation6], 1024   ;;  %p1612_p2 = pmov %p1611_p11 }
  0x55   : > { %v1172_v0 = vld [vmem:[#allocation5] sm:$0xff]   ;;  %v1173_v1 = vld [vmem:[#allocation5 + $0x8] sm:$0xff]   ;;  %v1174_v2 = vld [vmem:[#allocation5 + $0x10] sm:$0xff]   ;;  %s1527_s15 = scalar_lea.vmem [#allocation7], %s830_s29  ;;  %s927_s17 = sshll.u32 %s1369_s13, 11 }
  0x56   : > { %1305 = vsyncadd (%p1612_p2), [#allocation6], 4294966272  ;;  %1047 = vmatprep.subr.bf16.mxu0 %v1172_v0  ;;  %1095 = vmatprep.subr.bf16.mxu1 %v1172_v0  ;;  %v1175_v3 = vld [vmem:[#allocation5 + $0x18] sm:$0xff]   ;;  %v1180_v4 = vld [vmem:[%s1499_s23] sm:$0xff]   ;;  %s739_s4 = sshll.u32 %s1527_s15, 4  ;;  %s1546_s27 = scalar_lea.hbm %s1598_s2, %s927_s17  ;;  %s1548_s4 = int_to_ptr.vmem [resolvable:$true] %s739_s4 }
  0x57   : > { %1048 = vmatpush3.bf16.msra.mxu0 %v1172_v0  ;;  %1103 = vmatpush3.bf16.msra.mxu1 %v1172_v0  ;;  %v1181_v5 = vld [vmem:[%s1499_s23 + $0x40] sm:$0xff]   ;;  %v1177_v7 = vld [vmem:[#allocation5 + $0x28] sm:$0xff]   ;;  %v1178_v8 = vld [vmem:[#allocation5 + $0x30] sm:$0xff]   ;;  %s726_s22 = scalar_lea.sflag [#allocation4], %s1493_s19  ;;  %s1254_s28 = scalar_lea.vmem %s1548_s4, 2048 }
  0x58   : > { %1049 = vmatprep.subr.bf16.mxu0 %v1173_v1  ;;  %1096 = vmatprep.subr.bf16.mxu1 %v1173_v1  ;;  %v1176_v6 = vld [vmem:[#allocation5 + $0x20] sm:$0xff]   ;;  %v1179_v9 = vld [vmem:[#allocation5 + $0x38] sm:$0xff]   ;;  %v1182_v10 = vld [vmem:[%s1499_s23 + $0x8] sm:$0xff]   ;;  %p1255_p4 = scmp.ne.s32.totalorder %s1548_s4, %s1254_s28  ;;  %s1330_s3 = smov [#allocation7]  }
  0x59   : > { %1063 = vmatprep.mubr.bf16.mxu0 %v1180_v4  ;;  %1079 = vmatprep.mubr.bf16.mxu1 %v1181_v5  ;;  %v1183_v11 = vld [vmem:[%s1499_s23 + $0x48] sm:$0xff]   ;;  %v1184_v12 = vld [vmem:[%s1499_s23 + $0x10] sm:$0xff]   ;;  %v1186_v14 = vld [vmem:[%s1499_s23 + $0x18] sm:$0xff]   ;;  %s1258_s6 = sshll.u32 %s1330_s3, 4  ;;  %s1259_s6 = int_to_ptr.vmem [resolvable:$false] %s1258_s6 }
  0x5a   : > { %v1185_v13 = vld [vmem:[%s1499_s23 + $0x50] sm:$0xff]   ;;  %v1187_v15 = vld [vmem:[%s1499_s23 + $0x58] sm:$0xff]   ;;  %v1188_v16 = vld [vmem:[%s1499_s23 + $0x20] sm:$0xff]   ;;  %p1256_p6 = pnand %p1255_p4, %p1442_p12  ;;  %s1260_s7 = scalar_lea.vmem %s1259_s6, 4096 }
  0x5b   : > { %1050 = vmatpush3.bf16.msra.mxu0 %v1173_v1  ;;  %1104 = vmatpush3.bf16.msra.mxu1 %v1173_v1  ;;  %v1189_v17 = vld [vmem:[%s1499_s23 + $0x60] sm:$0xff]   ;;  %v1190_v18 = vld [vmem:[%s1499_s23 + $0x28] sm:$0xff]   ;;  %v1192_v20 = vld [vmem:[%s1499_s23 + $0x30] sm:$0xff]   ;;  %p1261_p10 = scmp.lt.s32.totalorder %s1548_s4, %s1259_s6  ;;  %p1262_p13 = scmp.lt.s32.totalorder %s1260_s7, %s1254_s28 }
  0x5c   : > { %1051 = vmatprep.subr.bf16.mxu0 %v1174_v2  ;;  %1097 = vmatprep.subr.bf16.mxu1 %v1174_v2  ;;  %v1191_v19 = vld [vmem:[%s1499_s23 + $0x68] sm:$0xff]   ;;  %v1193_v21 = vld [vmem:[%s1499_s23 + $0x70] sm:$0xff]   ;;  %v1194_v22 = vld [vmem:[%s1499_s23 + $0x38] sm:$0xff]   ;;  %p1257_p8 = pneg %p1256_p6 }
  0x5d   : > { %v1195_v23 = vld [vmem:[%s1499_s23 + $0x78] sm:$0xff]   ;;  %p1263_p3 = por %p1262_p13, %p1261_p10 }
  0x5f   : > { %1052 = vmatpush3.bf16.msra.mxu0 %v1174_v2  ;;  %1105 = vmatpush3.bf16.msra.mxu1 %v1174_v2  ;;  %p1264_p7 = pnand %p1263_p3, %p1257_p8 }
  0x60   : > { %1053 = vmatprep.subr.bf16.mxu0 %v1175_v3  ;;  %1098 = vmatprep.subr.bf16.mxu1 %v1175_v3 }
  0x63   : > { %1054 = vmatpush3.bf16.msra.mxu0 %v1175_v3  ;;  %1106 = vmatpush3.bf16.msra.mxu1 %v1175_v3 }
  0x64   : > { %1055 = vmatprep.subr.bf16.mxu0 %v1176_v6  ;;  %1099 = vmatprep.subr.bf16.mxu1 %v1176_v6 }
  0x67   : > { %1056 = vmatpush3.bf16.msra.mxu0 %v1176_v6  ;;  %1107 = vmatpush3.bf16.msra.mxu1 %v1176_v6 }
  0x68   : > { %1057 = vmatprep.subr.bf16.mxu0 %v1177_v7  ;;  %1100 = vmatprep.subr.bf16.mxu1 %v1177_v7 }
  0x6b   : > { %1058 = vmatpush3.bf16.msra.mxu0 %v1177_v7  ;;  %1108 = vmatpush3.bf16.msra.mxu1 %v1177_v7 }
  0x6c   : > { %1059 = vmatprep.subr.bf16.mxu0 %v1178_v8  ;;  %1101 = vmatprep.subr.bf16.mxu1 %v1178_v8 }
  0x6f   : > { %1060 = vmatpush3.bf16.msra.mxu0 %v1178_v8  ;;  %1109 = vmatpush3.bf16.msra.mxu1 %v1178_v8 }
  0x70   : > { %1061 = vmatprep.subr.bf16.mxu0 %v1179_v9  ;;  %1102 = vmatprep.subr.bf16.mxu1 %v1179_v9 }
  0x73   : > { %1062 = vmatpush3.bf16.msra.mxu0 %v1179_v9  ;;  %1110 = vmatpush3.bf16.msra.mxu1 %v1179_v9 }
  0x76   : > { %1064 = vmatmul.mubr.bf16.vlgmr.msra.gmra.mrb[0].mxu0 %v1182_v10  ;;  %1080 = vmatmul.mubr.bf16.vlgmr.msra.gmra.mrb[0].mxu1 %v1183_v11 }
  0x77   : > { %1067 = vmatprep.mubr.bf16.mxu0 %v1184_v12  ;;  %1083 = vmatprep.mubr.bf16.mxu1 %v1185_v13 }
  0x7e   : > { %1068 = vmatmul.mubr.bf16.gmra.mrb[4].mxu0 %v1186_v14  ;;  %1084 = vmatmul.mubr.bf16.gmra.mrb[4].mxu1 %v1187_v15 }
  0x7f   : > { %1071 = vmatprep.mubr.bf16.mxu0 %v1188_v16  ;;  %1087 = vmatprep.mubr.bf16.mxu1 %v1189_v17 }
  0x86   : > { %1072 = vmatmul.mubr.bf16.gmra.mrb[8].mxu0 %v1190_v18  ;;  %1088 = vmatmul.mubr.bf16.gmra.mrb[8].mxu1 %v1191_v19 }
  0x87   : > { %1075 = vmatprep.mubr.bf16.mxu0 %v1192_v20  ;;  %1091 = vmatprep.mubr.bf16.mxu1 %v1193_v21 }
  0x8e   : > { %1076 = vmatmul.mubr.bf16.gmra.mrb[12].mxu0 %v1194_v22  ;;  %1092 = vmatmul.mubr.bf16.gmra.mrb[12].mxu1 %v1195_v23 }
 0x149   : > { %v1065_v24 = vpop.f32.mrb[0].mxu0  ;;  %v1081_v25 = vpop.f32.mrb[0].mxu1 }
 0x14a   : > { %v406_v26 = vpop.f32.mrb[1].mxu0  ;;  %v470_v27 = vpop.f32.mrb[1].mxu1  ;;  %v535_v30 = vmax.f32 %v1065_v24, 0.0  ;;  %v551_v31 = vmax.f32 %v1081_v25, 0.0 }
 0x14b   : > { %v1066_v28 = vpop.f32.mrb[2].mxu0  ;;  %v1082_v29 = vpop.f32.mrb[2].mxu1  ;;  %v533_v36 = vmax.f32 %v406_v26, 0.0  ;;  %v549_v37 = vmax.f32 %v470_v27, 0.0 }
 0x14c   : > { %v536_v32 = vmax.f32 %v1066_v28, 0.0  ;;  %v552_v33 = vmax.f32 %v1082_v29, 0.0  ;;  %v409_v34 = vpop.f32.mrb[3].mxu0  ;;  %v473_v35 = vpop.f32.mrb[3].mxu1 }
 0x14d   : > { %v534_v38 = vmax.f32 %v409_v34, 0.0  ;;  %v550_v39 = vmax.f32 %v473_v35, 0.0 }
 0x14e   : > { %v936_v40 = vpack.c.bf16 %v536_v32, %v535_v30  ;;  %v976_v41 = vpack.c.bf16 %v552_v33, %v551_v31 }
 0x14f   : > { %v931_v42 = vpack.c.bf16 %v534_v38, %v533_v36  ;;  %v971_v43 = vpack.c.bf16 %v550_v39, %v549_v37 }
 0x150   : > { %1008 = vst [vmem:[%s1527_s15 + $0x8] sm:$0xff] %v936_v40   ;;  %1016 = vst [vmem:[%s1527_s15 + $0x48] sm:$0xff] %v976_v41  }
 0x151   : > { %932 = vst [vmem:[%s1527_s15] sm:$0xff] %v931_v42   ;;  %1015 = vst [vmem:[%s1527_s15 + $0x40] sm:$0xff] %v971_v43   ;;  %v1069_v44 = vpop.f32.mrb[4].mxu0  ;;  %v1085_v45 = vpop.f32.mrb[4].mxu1 }
 0x152   : > { %v422_v46 = vpop.f32.mrb[5].mxu0  ;;  %v486_v47 = vpop.f32.mrb[5].mxu1  ;;  %v539_v50 = vmax.f32 %v1069_v44, 0.0  ;;  %v555_v51 = vmax.f32 %v1085_v45, 0.0 }
 0x153   : > { %v1070_v48 = vpop.f32.mrb[6].mxu0  ;;  %v1086_v49 = vpop.f32.mrb[6].mxu1  ;;  %v537_v56 = vmax.f32 %v422_v46, 0.0  ;;  %v553_v57 = vmax.f32 %v486_v47, 0.0 }
 0x154   : > { %v540_v52 = vmax.f32 %v1070_v48, 0.0  ;;  %v556_v53 = vmax.f32 %v1086_v49, 0.0  ;;  %v425_v54 = vpop.f32.mrb[7].mxu0  ;;  %v489_v55 = vpop.f32.mrb[7].mxu1 }
 0x155   : > { %v538_v58 = vmax.f32 %v425_v54, 0.0  ;;  %v554_v59 = vmax.f32 %v489_v55, 0.0 }
 0x156   : > { %v946_v60 = vpack.c.bf16 %v540_v52, %v539_v50  ;;  %v986_v61 = vpack.c.bf16 %v556_v53, %v555_v51 }
 0x157   : > { %v941_v62 = vpack.c.bf16 %v538_v58, %v537_v56  ;;  %v981_v63 = vpack.c.bf16 %v554_v59, %v553_v57 }
 0x158   : > { %1010 = vst [vmem:[%s1527_s15 + $0x18] sm:$0xff] %v946_v60   ;;  %1018 = vst [vmem:[%s1527_s15 + $0x58] sm:$0xff] %v986_v61  }
 0x159   : > { %1009 = vst [vmem:[%s1527_s15 + $0x10] sm:$0xff] %v941_v62   ;;  %1017 = vst [vmem:[%s1527_s15 + $0x50] sm:$0xff] %v981_v63   ;;  %v1073_v0 = vpop.f32.mrb[8].mxu0  ;;  %v1089_v1 = vpop.f32.mrb[8].mxu1 }
 0x15a   : > { %v438_v2 = vpop.f32.mrb[9].mxu0  ;;  %v502_v3 = vpop.f32.mrb[9].mxu1  ;;  %v543_v6 = vmax.f32 %v1073_v0, 0.0  ;;  %v559_v7 = vmax.f32 %v1089_v1, 0.0 }
 0x15b   : > { %v1074_v4 = vpop.f32.mrb[10].mxu0  ;;  %v1090_v5 = vpop.f32.mrb[10].mxu1  ;;  %v541_v12 = vmax.f32 %v438_v2, 0.0  ;;  %v557_v13 = vmax.f32 %v502_v3, 0.0 }
 0x15c   : > { %v544_v8 = vmax.f32 %v1074_v4, 0.0  ;;  %v560_v9 = vmax.f32 %v1090_v5, 0.0  ;;  %v441_v10 = vpop.f32.mrb[11].mxu0  ;;  %v505_v11 = vpop.f32.mrb[11].mxu1 }
 0x15d   : > { %v542_v14 = vmax.f32 %v441_v10, 0.0  ;;  %v558_v15 = vmax.f32 %v505_v11, 0.0 }
 0x15e   : > { %v956_v16 = vpack.c.bf16 %v544_v8, %v543_v6  ;;  %v996_v17 = vpack.c.bf16 %v560_v9, %v559_v7 }
 0x15f   : > { %v951_v18 = vpack.c.bf16 %v542_v14, %v541_v12  ;;  %v991_v19 = vpack.c.bf16 %v558_v15, %v557_v13 }
 0x160   : > { %1012 = vst [vmem:[%s1527_s15 + $0x28] sm:$0xff] %v956_v16   ;;  %1020 = vst [vmem:[%s1527_s15 + $0x68] sm:$0xff] %v996_v17  }
 0x161   : > { %1011 = vst [vmem:[%s1527_s15 + $0x20] sm:$0xff] %v951_v18   ;;  %1019 = vst [vmem:[%s1527_s15 + $0x60] sm:$0xff] %v991_v19   ;;  %v1077_v20 = vpop.f32.mrb[12].mxu0  ;;  %v1093_v21 = vpop.f32.mrb[12].mxu1 }
 0x162   : > { %v454_v22 = vpop.f32.mrb[13].mxu0  ;;  %v518_v23 = vpop.f32.mrb[13].mxu1  ;;  %v547_v26 = vmax.f32 %v1077_v20, 0.0  ;;  %v563_v27 = vmax.f32 %v1093_v21, 0.0 }
 0x163   : > { %v1078_v24 = vpop.f32.mrb[14].mxu0  ;;  %v1094_v25 = vpop.f32.mrb[14].mxu1  ;;  %v545_v32 = vmax.f32 %v454_v22, 0.0  ;;  %v561_v33 = vmax.f32 %v518_v23, 0.0 }
 0x164   : > { %v548_v28 = vmax.f32 %v1078_v24, 0.0  ;;  %v564_v29 = vmax.f32 %v1094_v25, 0.0  ;;  %v457_v30 = vpop.f32.mrb[15].mxu0  ;;  %v521_v31 = vpop.f32.mrb[15].mxu1 }
 0x165   : > { %v546_v34 = vmax.f32 %v457_v30, 0.0  ;;  %v562_v35 = vmax.f32 %v521_v31, 0.0 }
 0x166   : > { %v966_v36 = vpack.c.bf16 %v548_v28, %v547_v26  ;;  %v1006_v37 = vpack.c.bf16 %v564_v29, %v563_v27 }
 0x167   : > { %v961_v38 = vpack.c.bf16 %v546_v34, %v545_v32  ;;  %v1001_v39 = vpack.c.bf16 %v562_v35, %v561_v33 }
 0x168   : > { %1014 = vst [vmem:[%s1527_s15 + $0x38] sm:$0xff] %v966_v36   ;;  %1022 = vst [vmem:[%s1527_s15 + $0x78] sm:$0xff] %v1006_v37  }
 0x169   : > { %1013 = vst [vmem:[%s1527_s15 + $0x30] sm:$0xff] %v961_v38   ;;  %1021 = vst [vmem:[%s1527_s15 + $0x70] sm:$0xff] %v1001_v39  }
 0x16a   : > { %1267 = shalt.err (!%p1264_p7)
}
 0x16b   : > { %s1268_s20 = scalar_lea.hbm %s1546_s27, 2048  ;;  %s1272_s25 = scalar_lea.hbm %s1598_s2, 4096 }
 0x16c   : > { %p1269_p9 = scmp.ne.s32.totalorder %s1546_s27, %s1268_s20  ;;  %p1273_p5 = scmp.lt.u32.totalorder %s1546_s27, %s1598_s2 }
 0x16d   : > { %p1274_p11 = scmp.lt.u32.totalorder %s1272_s25, %s1268_s20  ;;  %p1276_p4 = scmp.lt.u32.totalorder %s1268_s20, %s1546_s27 }
 0x16e   : > { %p1270_p1 = pnand %p1269_p9, %p1442_p12 }
 0x16f   : > { %p1275_p2 = por %p1274_p11, %p1273_p5 }
 0x170   : > { %p1271_p0 = pneg %p1270_p1 }
 0x171   : > { %p1277_p6 = por %p1276_p4, %p1275_p2 }
 0x173   : > { %p1278_p8 = pnand %p1277_p6, %p1271_p0 }
 0x175   : > { %1281 = shalt.err (!%p1278_p8)
}
 0x176   : > { %s1331_s30 = smov 64   ;;  %s1332_s23 = smov 4  }
 0x177   : > { %1117 = dma.vmem_to_hbm [thread:$0]  (%p1442_p12), %s1548_s4, 2048, %s1546_s27, %s726_s22, %s1331_s30, %s1331_s30, %s1332_s23  }
 0x178 PF: > { %s754_s15 = sand.u32 1, %s1312_s9   ;;  %p1613_p10 = scmp.ne.s32.totalorder %s1603_s16, 0 }
 0x179   : > { %p1614_p13 = scmp.ge.s32.totalorder %s1324_s12, 2  ;;  %s755_s17 = scalar_lea.sflag [#allocation4], %s754_s15 }
 0x17b   : > { %p1128_p3 = pnand %p1614_p13, %p1613_p10 }
 0x17d   : > { %1307 = dma.done.wait (!%p1128_p3), %s755_s17, 2048  }
 0x17e   : > { %1309 = vsyncadd (!%p1128_p3), %s755_s17, 4294965248  ;;  %p16_p7 = scmp.ge.s32.totalorder %s1404_s21, 4   ;;  %s1615_s9 = smov %s1316_s10 }
 0x17f   : > { %s1616_s10 = smov %s1320_s11  ;;  %s1617_s11 = smov %s1438_s8 }
 0x180   : > { %s1618_s12 = smov %s1404_s21  ;;  %18 = sbr.rel (!%p16_p7) target bundleno = 6 (0x6), region = 77 }
 0x187   :  { %760 = vsyncpa [#allocation3], 1 }
 0x188   :  { %762 = vsyncpa [#allocation3 + $0x1], 1 }
 0x189   :  { %763 = vsyncpa [#allocation6], 1 }
 0x18a   :  { %764 = vsyncpa [#allocation4], 1 }
 0x18b   :  { %766 = vsyncpa [#allocation4 + $0x1], 1 }

</bundles_post_ra>
